<compile_context>
chip_gen: v7x
topology: tpu7x:2x2x1
jax: 0.10.0
libtpu: 0.0.40
codegen_flags: <defaults>
</compile_context>

<pallas_src>
import jax
import jax.numpy as jnp
from jax import lax
from jax.experimental import pallas as pl
from jax.experimental.pallas import tpu as pltpu


def _round_up(x, m):
    return ((x + m - 1) // m) * m


# ----------------------------- kernels --------------------------------------


def _lora_kernel_fullk(x_ref, w_ref, u_ref, bT_ref, o_ref):
    """Grid = (S/tm, O/tn); the whole (padded) hidden axis lives in one block.

    One big MXU contraction + one tiny low-rank matmul per output tile; no
    accumulator scratch, no init/finalize branches, no block revisits.
    """
    base = lax.dot_general(
        x_ref[...],
        w_ref[...],
        dimension_numbers=(((1,), (1,)), ((), ())),   # contract shared H axis
        preferred_element_type=jnp.float32,
    )
    lora = jnp.dot(u_ref[...], bT_ref[...], preferred_element_type=jnp.float32)
    o_ref[...] = (base + lora).astype(o_ref.dtype)


def _lora_kernel_multik(x_ref, w_ref, u_ref, bT_ref, o_ref, acc_ref):
    """Fallback grid = (S/tm, O/tn, H/tk) when H is too large for one block.

    Inner k-loop: a single MXU op + accumulator RMW.  Finalize adds the
    low-rank LoRA term (scaling already folded into bT) and casts out.
    """
    k = pl.program_id(2)

    @pl.when(k == 0)
    def _():
        acc_ref[...] = jnp.zeros_like(acc_ref)

    acc_ref[...] += lax.dot_general(
        x_ref[...],
        w_ref[...],
        dimension_numbers=(((1,), (1,)), ((), ())),
        preferred_element_type=jnp.float32,
    )

    @pl.when(k == pl.num_programs(2) - 1)
    def _():
        lora = jnp.dot(u_ref[...], bT_ref[...], preferred_element_type=jnp.float32)
        o_ref[...] = (acc_ref[...] + lora).astype(o_ref.dtype)


# --------------------------- tile selection ----------------------------------

_VMEM_LIMIT_BYTES = 32 * 1024 * 1024   # above v5e's 16 MiB scoped default,
                                       # well inside v7x's 64 MiB physical VMEM


def _choose_tiles(O, H, *, tm_max=256, tn_max=512, vmem_budget_bytes=20 << 20):
    """Pick (tm_max, tn, tk). Prefer tk == full H (single k-step); shrink tk
    until the double-buffered footprint fits the cross-generation budget."""
    tn = min(tn_max, _round_up(O, 128))
    tk = _round_up(H, 128)

    def footprint(tk_):
        # double-buffered bf16 x/w blocks + double-buffered f32 out + f32 acc
        return (2 * (tm_max * tk_ * 2 + tn * tk_ * 2 + tm_max * tn * 4)
                + tm_max * tn * 4)

    while tk > 512 and footprint(tk) > vmem_budget_bytes:
        tk = _round_up(pl.cdiv(tk, 2), 128)
    return tm_max, tn, tk


# --------------------------- host-side wrappers ------------------------------


def prepare_lora_linear(w, a, b, *, lora_alpha, lora_r,
                        compute_dtype=jnp.bfloat16,
                        tm_max=256, tn_max=512,
                        vmem_budget_bytes=20 << 20,
                        tk=None):
    """One-time (per projection / per adapter load) weight preparation.

    Hoists out of the per-token hot path:
      * W cast to the MXU compute dtype (bf16),
      * W / B^T padding to tile multiples,
      * folding of the LoRA scaling (alpha / r) into the tiny B factor.

    w: [O, H]   a: [r, H]   b: [O, r]   (torch.nn.Linear / peft conventions)
    """
    O, H = w.shape
    r = a.shape[0]
    assert a.shape == (r, H) and b.shape == (O, r)
    scaling = float(lora_alpha) / float(lora_r)

    tm_max, tn, tk_sel = _choose_tiles(O, H, tm_max=tm_max, tn_max=tn_max,
                                       vmem_budget_bytes=vmem_budget_bytes)
    if tk is not None:  # explicit override (testing / hand tuning)
        tk_sel = min(_round_up(tk, 128), _round_up(H, 128))
    tk = tk_sel

    Op, Hp = _round_up(O, tn), _round_up(H, tk)

    wc = w.astype(compute_dtype)                 # [O, H] bf16, cast ONCE
    if (Op, Hp) != (O, H):
        wc = jnp.pad(wc, ((0, Op - O), (0, Hp - H)))   # zero-pad is exact

    aT = a.astype(compute_dtype).T               # [H, r] for u = x @ aT (bf16)
    bT = (scaling * b.astype(jnp.float32)).T     # [r, O] f32, scaling folded in
    if Op != O:
        bT = jnp.pad(bT, ((0, 0), (0, Op - O)))

    return dict(wc=wc, aT=aT, bT=bT, O=O, H=H, r=r,
                tm_max=tm_max, tn=tn, tk=tk, Op=Op, Hp=Hp,
                compute_dtype=compute_dtype)


def lora_linear(x, prepared, *, out_dtype=None):
    """y = x @ W^T + (alpha/r) * (x @ A^T) @ B^T   using prepared weights.

    x: [S, H]  ->  y: [S, O]
    """
    S, H = x.shape
    p = prepared
    assert H == p["H"], f"hidden dim mismatch: {H} vs {p['H']}"
    out_dtype = x.dtype if out_dtype is None else out_dtype

    cd = p["compute_dtype"]
    r, tn, tk, Op, Hp, O = p["r"], p["tn"], p["tk"], p["Op"], p["Hp"], p["O"]

    # bf16 packs 16 rows per vreg sublane group; round S accordingly.
    sub = 16 if jnp.dtype(cd).itemsize == 2 else 8
    tm = min(p["tm_max"], _round_up(S, sub))
    Sp = _round_up(S, tm)

    xc = x.astype(cd)
    # Hoisted LoRA A-path: one tiny [S, r] result computed from the already
    # bf16-cast activations (single HBM pass over x), kept f32 for the
    # finalize matmul (K = r, negligible work).
    u = jnp.dot(xc, p["aT"], preferred_element_type=jnp.float32)

    if (Sp, Hp) != (S, H):
        xc = jnp.pad(xc, ((0, Sp - S), (0, Hp - H)))
    if Sp != S:
        u = jnp.pad(u, ((0, Sp - S), (0, 0)))

    grid_k = Hp // tk
    assert Hp % tk == 0

    if grid_k == 1:
        out = pl.pallas_call(
            _lora_kernel_fullk,
            out_shape=jax.ShapeDtypeStruct((Sp, Op), out_dtype),
            grid_spec=pltpu.PrefetchScalarGridSpec(
                num_scalar_prefetch=0,
                grid=(Sp // tm, Op // tn),
                in_specs=[
                    pl.BlockSpec((tm, Hp), lambda i, j: (i, 0)),   # x (bf16)
                    pl.BlockSpec((tn, Hp), lambda i, j: (j, 0)),   # W [O, H] (bf16)
                    pl.BlockSpec((tm, r), lambda i, j: (i, 0)),    # u = x @ A^T
                    pl.BlockSpec((r, tn), lambda i, j: (0, j)),    # scaled B^T
                ],
                out_specs=pl.BlockSpec((tm, tn), lambda i, j: (i, j)),
            ),
            compiler_params=pltpu.CompilerParams(
                dimension_semantics=("parallel", "parallel"),
                vmem_limit_bytes=_VMEM_LIMIT_BYTES,
            ),
        )(xc, p["wc"], u, p["bT"])
    else:
        out = pl.pallas_call(
            _lora_kernel_multik,
            out_shape=jax.ShapeDtypeStruct((Sp, Op), out_dtype),
            grid_spec=pltpu.PrefetchScalarGridSpec(
                num_scalar_prefetch=0,
                grid=(Sp // tm, Op // tn, grid_k),
                in_specs=[
                    pl.BlockSpec((tm, tk), lambda i, j, k: (i, k)),
                    pl.BlockSpec((tn, tk), lambda i, j, k: (j, k)),
                    pl.BlockSpec((tm, r), lambda i, j, k: (i, 0)),
                    pl.BlockSpec((r, tn), lambda i, j, k: (0, j)),
                ],
                out_specs=pl.BlockSpec((tm, tn), lambda i, j, k: (i, j)),
                scratch_shapes=[pltpu.VMEM((tm, tn), jnp.float32)],
            ),
            compiler_params=pltpu.CompilerParams(
                dimension_semantics=("parallel", "parallel", "arbitrary"),
                vmem_limit_bytes=_VMEM_LIMIT_BYTES,
            ),
        )(xc, p["wc"], u, p["bT"])

    if (Sp, Op) != (S, O):
        out = out[:S, :O]
    return out


def lora_linear_ref(x, w, a, b, *, lora_alpha, lora_r,
                    compute_dtype=jnp.bfloat16):
    """Pure-JAX reference mirroring the kernel's numerics (bf16 MXU operands,
    f32 accumulation, f32 low-rank finalize)."""
    scaling = float(lora_alpha) / float(lora_r)
    xc = x.astype(compute_dtype)
    base = jnp.dot(xc, w.astype(compute_dtype).T,
                   preferred_element_type=jnp.float32)
    u = jnp.dot(xc, a.astype(compute_dtype).T,
                preferred_element_type=jnp.float32)
    lora = u @ (scaling * b.astype(jnp.float32)).T
    return (base + lora).astype(x.dtype)


if __name__ == "__main__":
    # Small deterministic stand-in for one LoRA-adapted Qwen projection.
    # OUT = 384 does not divide the 512-wide output tile so the pad/slice
    # fallback is exercised; a second run with a forced small tk exercises the
    # multi-k accumulator kernel.
    SEQ, HIDDEN, OUT = 64, 512, 384
    LORA_R, LORA_ALPHA = 8, 16

    key = jax.random.PRNGKey(0)
    kx, kw, ka, kb = jax.random.split(key, 4)

    x = jax.random.normal(kx, (SEQ, HIDDEN), dtype=jnp.float32)
    w = jax.random.normal(kw, (OUT, HIDDEN), dtype=jnp.float32) * 0.02
    # peft initializes A ~ kaiming, B = 0; use small random B so the LoRA path
    # contributes non-trivially and is actually checked.
    a = jax.random.normal(ka, (LORA_R, HIDDEN), dtype=jnp.float32) * 0.02
    b = jax.random.normal(kb, (OUT, LORA_R), dtype=jnp.float32) * 0.02

    y_ref = lora_linear_ref(x, w, a, b, lora_alpha=LORA_ALPHA, lora_r=LORA_R)

    # Weight prep done ONCE (outside the generation hot loop).
    prepared = prepare_lora_linear(w, a, b, lora_alpha=LORA_ALPHA, lora_r=LORA_R)
    y = jax.block_until_ready(lora_linear(x, prepared))
    assert y.shape == (SEQ, OUT)
    assert jnp.allclose(y, y_ref, atol=2e-2, rtol=2e-2), "full-k kernel mismatch"

    # Multi-k fallback path (forced small tk -> 2 k-steps).
    prepared_mk = prepare_lora_linear(w, a, b, lora_alpha=LORA_ALPHA,
                                      lora_r=LORA_R, tk=256)
    y2 = jax.block_until_ready(lora_linear(x, prepared_mk))
    assert jnp.allclose(y2, y_ref, atol=2e-2, rtol=2e-2), "multi-k kernel mismatch"

    print("KERNEL_OK")
</pallas_src>

<mosaic_0001>
module attributes {stable_mosaic.version = 11 : i64} {
  func.func @_lora_kernel_fullk(%arg0: i32, %arg1: i32, %arg2: memref<64x512xbf16, #tpu.memory_space<vmem>>, %arg3: memref<384x512xbf16, #tpu.memory_space<vmem>>, %arg4: memref<64x8xf32, #tpu.memory_space<vmem>>, %arg5: memref<8x384xf32, #tpu.memory_space<vmem>>, %arg6: memref<64x384xf32, #tpu.memory_space<vmem>>) attributes {dimension_semantics = [#tpu.dimension_semantics<parallel>, #tpu.dimension_semantics<parallel>], iteration_bounds = array<i64: 1, 1>, scalar_prefetch = 0 : i64, scratch_operands = 0 : i64, tpu.core_type = #tpu.core_type<tc>, window_params = [{transform_indices = @transform_0, window_bounds = array<i64: 64, 512>}, {transform_indices = @transform_1, window_bounds = array<i64: 384, 512>}, {transform_indices = @transform_2, window_bounds = array<i64: 64, 8>}, {transform_indices = @transform_3, window_bounds = array<i64: 8, 384>}, {transform_indices = @transform_4, window_bounds = array<i64: 64, 384>}]} {
    %c0 = arith.constant 0 : index
    %c0_0 = arith.constant 0 : index
    %0 = vector.load %arg2[%c0, %c0_0] : memref<64x512xbf16, #tpu.memory_space<vmem>>, vector<64x512xbf16>
    %c0_1 = arith.constant 0 : index
    %c0_2 = arith.constant 0 : index
    %1 = vector.load %arg3[%c0_1, %c0_2] : memref<384x512xbf16, #tpu.memory_space<vmem>>, vector<384x512xbf16>
    %cst = arith.constant dense<0.000000e+00> : vector<64x384xf32>
    %2 = tpu.matmul %0, %1, %cst {dimension_numbers = #tpu.dot_dimension_numbers<[1], [1], [0], [0], [0, 0, 1, 0], [], []>} : vector<64x512xbf16>, vector<384x512xbf16>, vector<64x384xf32> -> vector<64x384xf32>
    %c0_3 = arith.constant 0 : index
    %c0_4 = arith.constant 0 : index
    %3 = vector.load %arg4[%c0_3, %c0_4] : memref<64x8xf32, #tpu.memory_space<vmem>>, vector<64x8xf32>
    %c0_5 = arith.constant 0 : index
    %c0_6 = arith.constant 0 : index
    %4 = vector.load %arg5[%c0_5, %c0_6] : memref<8x384xf32, #tpu.memory_space<vmem>>, vector<8x384xf32>
    %cst_7 = arith.constant dense<0.000000e+00> : vector<64x384xf32>
    %5 = tpu.matmul %3, %4, %cst_7 {dimension_numbers = #tpu.dot_dimension_numbers<[1], [0], [0], [1], [0, 0, 1, 1], [], []>} : vector<64x8xf32>, vector<8x384xf32>, vector<64x384xf32> -> vector<64x384xf32>
    %6 = arith.addf %2, %5 : vector<64x384xf32>
    %c0_8 = arith.constant 0 : index
    %c0_9 = arith.constant 0 : index
    %7 = vector.load %arg6[%c0_8, %c0_9] : memref<64x384xf32, #tpu.memory_space<vmem>>, vector<64x384xf32>
    tpu.vector_store %arg6[%c0_8, %c0_9], %6 {strides = array<i32>} : memref<64x384xf32, #tpu.memory_space<vmem>>, vector<64x384xf32>,
    return
  }
  func.func @transform_0(%arg0: i32, %arg1: i32) -> (i32, i32) {
    %c0_i32 = arith.constant 0 : i32
    %c0_i32_0 = arith.constant 0 : i32
    return %arg0, %c0_i32 : i32, i32
  }
  func.func @transform_1(%arg0: i32, %arg1: i32) -> (i32, i32) {
    %c0_i32 = arith.constant 0 : i32
    %c0_i32_0 = arith.constant 0 : i32
    return %arg1, %c0_i32 : i32, i32
  }
  func.func @transform_2(%arg0: i32, %arg1: i32) -> (i32, i32) {
    %c0_i32 = arith.constant 0 : i32
    %c0_i32_0 = arith.constant 0 : i32
    return %arg0, %c0_i32 : i32, i32
  }
  func.func @transform_3(%arg0: i32, %arg1: i32) -> (i32, i32) {
    %c0_i32 = arith.constant 0 : i32
    %c0_i32_0 = arith.constant 0 : i32
    return %c0_i32, %arg1 : i32, i32
  }
  func.func @transform_4(%arg0: i32, %arg1: i32) -> (i32, i32) {
    %c0_i32 = arith.constant 0 : i32
    return %arg0, %arg1 : i32, i32
  }
}

</mosaic_0001>

<bundles_post_ra>
// kernel: tpu_custom_call.1
= control target key start
LH: loop header
LB: loop body
LE: loop exit
PB: predicated region body
PF: predicated region fallthrough
CT: control target
= control target key end

     0   :  { %9 = vsyncpa [#allocation3], 0  ;;  %s1908_s0 = inlined_call_operand.hbm [shape: bf16[64,512], index: 0, kind: input, shape index: {}]   ;;  %s1909_s1 = inlined_call_operand.hbm [shape: bf16[384,512], index: 1, kind: input, shape index: {}]   ;;  %s1910_s2 = inlined_call_operand.vmem [shape: f32[64,8], index: 2, kind: input, shape index: {}]   ;;  %s1911_s3 = inlined_call_operand.vmem [shape: f32[8,384], index: 3, kind: input, shape index: {}]   ;;  %s1912_s4 = inlined_call_operand.hbm [shape: f32[64,384], index: 4, kind: output, shape index: {}]  }
   0x1   :  { %10 = vsyncpa [#allocation6], 0 }
   0x2   :  { %11 = vsyncpa [#allocation4], 0  ;;  %s1690_s15 = smov [#allocation2]   ;;  %s1618_s19 = scalar_lea.hbm %s1908_s0, 2048 }
   0x3   :  { %s17_s16 = sshll.u32 %s1690_s15, 4  ;;  %p1619_p0 = scmp.ne.s32.totalorder %s1908_s0, %s1618_s19  ;;  %s18_s16 = int_to_ptr.vmem [resolvable:$true] %s17_s16 }
   0x4   :  { %p1622_p1 = scmp.lt.u32.totalorder %s1618_s19, %s1908_s0 }
   0x6   :  { %p1624_p2 = pnand %p1622_p1, %p1619_p0 }
   0x8   :  { %1627 = shalt.err (!%p1624_p2)
}
   0x9   :  { %s1628_s24 = scalar_lea.vmem %s18_s16, 2048  ;;  %p1633_p4 = scmp.lt.s32.totalorder %s18_s16, %s18_s16 }
   0xa   :  { %p1629_p3 = scmp.ne.s32.totalorder %s18_s16, %s1628_s24  ;;  %p1634_p5 = scmp.lt.s32.totalorder %s1628_s24, %s1628_s24 }
   0xc   :  { %p1635_p6 = por %p1634_p5, %p1633_p4 }
   0xe   :  { %p1636_p7 = pnand %p1635_p6, %p1629_p3 }
  0x10   :  { %1639 = shalt.err (!%p1636_p7)
}
  0x11   :  { %s1691_s25 = smov 256   ;;  %s1692_s26 = smov 16  }
  0x12   :  { %23 = dma.hbm_to_vmem [thread:$0]  %s1908_s0, 2048, %s18_s16, [#allocation3], %s1691_s25, %s1691_s25, %s1692_s26  }
  0x13   :  { %s1693_s29 = smov [#allocation5]   ;;  %s1640_s7 = scalar_lea.hbm %s1909_s1, 12288 }
  0x14   :  { %s29_s30 = sshll.u32 %s1693_s29, 4  ;;  %p1641_p8 = scmp.ne.s32.totalorder %s1909_s1, %s1640_s7  ;;  %s30_s30 = int_to_ptr.vmem [resolvable:$true] %s29_s30 }
  0x15   :  { %p1644_p9 = scmp.lt.u32.totalorder %s1640_s7, %s1909_s1 }
  0x17   :  { %p1646_p10 = pnand %p1644_p9, %p1641_p8 }
  0x19   :  { %1649 = shalt.err (!%p1646_p10)
}
  0x1a   :  { %s1650_s12 = scalar_lea.vmem %s30_s30, 12288  ;;  %p1655_p12 = scmp.lt.s32.totalorder %s30_s30, %s30_s30 }
  0x1b   :  { %p1651_p11 = scmp.ne.s32.totalorder %s30_s30, %s1650_s12  ;;  %p1656_p13 = scmp.lt.s32.totalorder %s1650_s12, %s1650_s12 }
  0x1d   :  { %p1657_p0 = por %p1656_p13, %p1655_p12 }
  0x1f   :  { %p1658_p1 = pnand %p1657_p0, %p1651_p11 }
  0x21   :  { %1661 = shalt.err (!%p1658_p1)
}
  0x22   :  { %35 = dma.hbm_to_vmem [thread:$0]  %s1909_s1, 12288, %s30_s30, [#allocation6], %s1691_s25, %s1691_s25, %s1692_s26  }
  0x23   :  { %1684 = dma.done.wait [#allocation3], 2048  }
  0x24   :  { %1685 = vsyncadd [#allocation3], 4294965248 }
  0x25   :  { %1686 = dma.done.wait [#allocation6], 12288  }
  0x26   :  { %1687 = vsyncadd [#allocation6], 4294955008  ;;  %v1694_v0 = vmov 0.0   ;;  %v168_v1 = vld [vmem:[%s1911_s3 + $0x8] sm:$0xff]  ;;  %v169_v2 = vld [vmem:[%s1911_s3 + $0x10] sm:$0xff]  ;;  %vm170_vm0 = vcmask 64512  }
  0x27   :  { %259 = vmatprep.mubr.f32.mxu0 %v1694_v0  ;;  %v167_v3 = vld [vmem:[%s1911_s3] sm:$0xff]  ;;  %195 = vmatprep.subr.mxu0 %v168_v1  ;;  %v1455_v6 = vld [vmem:[#allocation5 + $0xc] ss:$16 sps:$4 sm:$0xff]   ;;  %v1453_v9 = vld [vmem:[#allocation5 + $0x8] ss:$16 sps:$4 sm:$0xff]  }
  0x28   :  { %1428 = vmatprep.subr.mxu1 %v169_v2  ;;  %v159_v4 = vld [vmem:[%s1910_s2] sm:$0xff]  ;;  %196 = vmatpush1.msra.mxu0 %v167_v3  ;;  %v160_v7 = vld [vmem:[%s1910_s2 + $0x8] sm:$0xff]  ;;  %v161_v25 = vld [vmem:[%s1910_s2 + $0x10] sm:$0xff] }
  0x29   :  { %1429 = vmatpush3.msra.mxu1 %v169_v2  ;;  %v1452_v5 = vld [vmem:[#allocation5 + $0x4] ss:$16 sps:$4 sm:$0xff]   ;;  %1291 = vmatmul.mubr.msk.f32.vlgmr.msra.gmra.mrb[0].mxu0 %vm170_vm0, %v159_v4  ;;  %v1450_v8 = vld [vmem:[#allocation5] ss:$16 sps:$4 sm:$0xff]   ;;  %v1461_v11 = vld [vmem:[#allocation5 + $0x2c] ss:$16 sps:$4 sm:$0xff]  }
  0x2a   :  { %1430 = vmatprep.mubr.msk.f32.mxu1 %vm170_vm0, %v159_v4  ;;  %973 = vmatprep.subr.bf16.mxu0 %v1452_v5  ;;  %v1458_v10 = vld [vmem:[#allocation5 + $0x24] ss:$16 sps:$4 sm:$0xff]   ;;  %v1456_v12 = vld [vmem:[#allocation5 + $0x20] ss:$16 sps:$4 sm:$0xff]   ;;  %v1459_v13 = vld [vmem:[#allocation5 + $0x28] ss:$16 sps:$4 sm:$0xff]  }
  0x2b   :  { %265 = vmatprep.mubr.f32.mxu0 %v1694_v0  ;;  %1046 = vmatprep.subr.bf16.mxu1 %v1455_v6  ;;  %v1464_v14 = vld [vmem:[#allocation5 + $0x44] ss:$16 sps:$4 sm:$0xff]   ;;  %v1467_v15 = vld [vmem:[#allocation5 + $0x4c] ss:$16 sps:$4 sm:$0xff]   ;;  %v1462_v16 = vld [vmem:[#allocation5 + $0x40] ss:$16 sps:$4 sm:$0xff]  }
  0x2c   :  { %1431 = vmatmul.mubr.msk.f32.vlgmr.msra.gmra.mrb[0].mxu1 %vm170_vm0, %v160_v7  ;;  %v1465_v17 = vld [vmem:[#allocation5 + $0x48] ss:$16 sps:$4 sm:$0xff]   ;;  %v1470_v18 = vld [vmem:[#allocation5 + $0x64] ss:$16 sps:$4 sm:$0xff]   ;;  %v1473_v19 = vld [vmem:[#allocation5 + $0x6c] ss:$16 sps:$4 sm:$0xff]  }
  0x2d   :  { %1292 = vmatmul.mubr.msk.f32.gmra.mrb[2].mxu0 %vm170_vm0, %v160_v7  ;;  %v1468_v20 = vld [vmem:[#allocation5 + $0x60] ss:$16 sps:$4 sm:$0xff]   ;;  %v1471_v21 = vld [vmem:[#allocation5 + $0x68] ss:$16 sps:$4 sm:$0xff]   ;;  %v1476_v22 = vld [vmem:[#allocation5 + $0x84] ss:$16 sps:$4 sm:$0xff]   ;;  %1433 = vmatprep.mubr.msk.f32.mxu1 %vm170_vm0, %v161_v25 }
  0x2e   :  { %271 = vmatprep.mubr.f32.mxu0 %v1694_v0  ;;  %v1479_v23 = vld [vmem:[#allocation5 + $0x8c] ss:$16 sps:$4 sm:$0xff]   ;;  %v1474_v24 = vld [vmem:[#allocation5 + $0x80] ss:$16 sps:$4 sm:$0xff]   ;;  %v1477_v26 = vld [vmem:[#allocation5 + $0x88] ss:$16 sps:$4 sm:$0xff]  }
  0x2f   :  { %974 = vmatpush1.bf16.xpose.msra.mxu0 %v1450_v8  ;;  %v1482_v27 = vld [vmem:[#allocation5 + $0xa4] ss:$16 sps:$4 sm:$0xff]   ;;  %v1485_v28 = vld [vmem:[#allocation5 + $0xac] ss:$16 sps:$4 sm:$0xff]   ;;  %v1480_v31 = vld [vmem:[#allocation5 + $0xa0] ss:$16 sps:$4 sm:$0xff]  }
  0x30   :  { %1047 = vmatpush1.bf16.xpose.msra.mxu1 %v1453_v9  ;;  %975 = vmatprep.subr.bf16.mxu0 %v1458_v10  ;;  %v162_v29 = vld [vmem:[%s1910_s2 + $0x18] sm:$0xff]  ;;  %v163_v30 = vld [vmem:[%s1910_s2 + $0x20] sm:$0xff]  ;;  %v164_v32 = vld [vmem:[%s1910_s2 + $0x28] sm:$0xff] }
  0x31   :  { %1048 = vmatprep.subr.bf16.mxu1 %v1461_v11  ;;  %1293 = vmatmul.mubr.msk.f32.gmra.mrb[4].mxu0 %vm170_vm0, %v161_v25  ;;  %v1483_v33 = vld [vmem:[#allocation5 + $0xa8] ss:$16 sps:$4 sm:$0xff]   ;;  %v165_v34 = vld [vmem:[%s1910_s2 + $0x30] sm:$0xff]  ;;  %v1491_v36 = vld [vmem:[#allocation5 + $0xcc] ss:$16 sps:$4 sm:$0xff]  }
  0x32   :  { %277 = vmatprep.mubr.f32.mxu0 %v1694_v0  ;;  %1434 = vmatmul.mubr.msk.f32.gmra.mrb[2].mxu1 %vm170_vm0, %v162_v29  ;;  %v1488_v35 = vld [vmem:[#allocation5 + $0xc4] ss:$16 sps:$4 sm:$0xff]   ;;  %v166_v37 = vld [vmem:[%s1910_s2 + $0x38] sm:$0xff]  ;;  %v1486_v39 = vld [vmem:[#allocation5 + $0xc0] ss:$16 sps:$4 sm:$0xff]   ;;  %s1695_s2 = smov [#allocation7]  }
  0x33   :  { %1436 = vmatprep.mubr.msk.f32.mxu1 %vm170_vm0, %v163_v30  ;;  %v1799_v38 = vld [vmem:[#allocation2 + $0xc] ss:$16 sps:$4 sm:$0xff]   ;;  %v1489_v40 = vld [vmem:[#allocation5 + $0xc8] ss:$16 sps:$4 sm:$0xff]   ;;  %v1494_v41 = vld [vmem:[#allocation5 + $0xe4] ss:$16 sps:$4 sm:$0xff]  }
  0x34   :  { %v1497_v42 = vld [vmem:[#allocation5 + $0xec] ss:$16 sps:$4 sm:$0xff]   ;;  %v1806_v43 = vld [vmem:[#allocation2 + $0x4] ss:$16 sps:$4 sm:$0xff]   ;;  %v1492_v44 = vld [vmem:[#allocation5 + $0xe0] ss:$16 sps:$4 sm:$0xff]  }
  0x35   :  { %1294 = vmatmul.mubr.msk.f32.gmra.mrb[6].mxu0 %vm170_vm0, %v162_v29  ;;  %v1495_v45 = vld [vmem:[#allocation5 + $0xe8] ss:$16 sps:$4 sm:$0xff]   ;;  %v1500_v46 = vld [vmem:[#allocation5 + $0x104] ss:$16 sps:$4 sm:$0xff]   ;;  %v1503_v47 = vld [vmem:[#allocation5 + $0x10c] ss:$16 sps:$4 sm:$0xff]  }
  0x36   :  { %283 = vmatprep.mubr.f32.mxu0 %v1694_v0  ;;  %1437 = vmatmul.mubr.msk.f32.gmra.mrb[4].mxu1 %vm170_vm0, %v164_v32  ;;  %v1498_v48 = vld [vmem:[#allocation5 + $0x100] ss:$16 sps:$4 sm:$0xff]   ;;  %v1501_v49 = vld [vmem:[#allocation5 + $0x108] ss:$16 sps:$4 sm:$0xff]   ;;  %v1506_v50 = vld [vmem:[#allocation5 + $0x124] ss:$16 sps:$4 sm:$0xff]  }
  0x37   :  { %976 = vmatpush1.bf16.xpose.msra.mxu0 %v1456_v12  ;;  %1439 = vmatprep.mubr.msk.f32.mxu1 %vm170_vm0, %v165_v34  ;;  %v1509_v51 = vld [vmem:[#allocation5 + $0x12c] ss:$16 sps:$4 sm:$0xff]   ;;  %v1504_v52 = vld [vmem:[#allocation5 + $0x120] ss:$16 sps:$4 sm:$0xff]   ;;  %v1507_v53 = vld [vmem:[#allocation5 + $0x128] ss:$16 sps:$4 sm:$0xff]  }
  0x38   :  { %1049 = vmatpush1.bf16.xpose.msra.mxu1 %v1459_v13  ;;  %977 = vmatprep.subr.bf16.mxu0 %v1464_v14  ;;  %v1512_v54 = vld [vmem:[#allocation5 + $0x144] ss:$16 sps:$4 sm:$0xff]   ;;  %v1515_v55 = vld [vmem:[#allocation5 + $0x14c] ss:$16 sps:$4 sm:$0xff]   ;;  %v1510_v56 = vld [vmem:[#allocation5 + $0x140] ss:$16 sps:$4 sm:$0xff]  }
  0x39   :  { %1050 = vmatprep.subr.bf16.mxu1 %v1467_v15  ;;  %1295 = vmatmul.mubr.msk.f32.gmra.mrb[8].mxu0 %vm170_vm0, %v163_v30  ;;  %v1513_v57 = vld [vmem:[#allocation5 + $0x148] ss:$16 sps:$4 sm:$0xff]   ;;  %v1518_v58 = vld [vmem:[#allocation5 + $0x164] ss:$16 sps:$4 sm:$0xff]   ;;  %v1521_v59 = vld [vmem:[#allocation5 + $0x16c] ss:$16 sps:$4 sm:$0xff]  }
  0x3a   :  { %289 = vmatprep.mubr.f32.mxu0 %v1694_v0  ;;  %1440 = vmatmul.mubr.msk.f32.gmra.mrb[6].mxu1 %vm170_vm0, %v166_v37  ;;  %v1516_v60 = vld [vmem:[#allocation5 + $0x160] ss:$16 sps:$4 sm:$0xff]   ;;  %v1519_v61 = vld [vmem:[#allocation5 + $0x168] ss:$16 sps:$4 sm:$0xff]   ;;  %v1524_v62 = vld [vmem:[#allocation5 + $0x184] ss:$16 sps:$4 sm:$0xff]  }
  0x3b   :  { %1078 = vmatprep.mubr.bf16.mxu1 %v1799_v38  ;;  %v1527_v63 = vld [vmem:[#allocation5 + $0x18c] ss:$16 sps:$4 sm:$0xff]   ;;  %v1525_v1 = vld [vmem:[#allocation5 + $0x188] ss:$16 sps:$4 sm:$0xff]   ;;  %v1530_v2 = vld [vmem:[#allocation5 + $0x1a4] ss:$16 sps:$4 sm:$0xff]  }
  0x3c   :  { %v1533_v3 = vld [vmem:[#allocation5 + $0x1ac] ss:$16 sps:$4 sm:$0xff]   ;;  %v1528_v4 = vld [vmem:[#allocation5 + $0x1a0] ss:$16 sps:$4 sm:$0xff]   ;;  %v1531_v5 = vld [vmem:[#allocation5 + $0x1a8] ss:$16 sps:$4 sm:$0xff]  }
  0x3d   :  { %1296 = vmatmul.mubr.msk.f32.gmra.mrb[10].mxu0 %vm170_vm0, %v164_v32  ;;  %v1536_v6 = vld [vmem:[#allocation5 + $0x1c4] ss:$16 sps:$4 sm:$0xff]   ;;  %v1539_v7 = vld [vmem:[#allocation5 + $0x1cc] ss:$16 sps:$4 sm:$0xff]   ;;  %v1534_v8 = vld [vmem:[#allocation5 + $0x1c0] ss:$16 sps:$4 sm:$0xff]  }
  0x3e   :  { %295 = vmatprep.mubr.f32.mxu0 %v1694_v0  ;;  %v1537_v9 = vld [vmem:[#allocation5 + $0x1c8] ss:$16 sps:$4 sm:$0xff]   ;;  %v1542_v10 = vld [vmem:[#allocation5 + $0x1e4] ss:$16 sps:$4 sm:$0xff]   ;;  %v1545_v11 = vld [vmem:[#allocation5 + $0x1ec] ss:$16 sps:$4 sm:$0xff]  }
  0x3f   :  { %978 = vmatpush1.bf16.xpose.msra.mxu0 %v1462_v16  ;;  %v1540_v12 = vld [vmem:[#allocation5 + $0x1e0] ss:$16 sps:$4 sm:$0xff]   ;;  %v1543_v13 = vld [vmem:[#allocation5 + $0x1e8] ss:$16 sps:$4 sm:$0xff]   ;;  %v1554_v14 = vld [vmem:[#allocation5 + $0x204] ss:$16 sps:$4 sm:$0xff]  }
  0x40   :  { %1051 = vmatpush1.bf16.xpose.msra.mxu1 %v1465_v17  ;;  %979 = vmatprep.subr.bf16.mxu0 %v1470_v18  ;;  %v1557_v15 = vld [vmem:[#allocation5 + $0x20c] ss:$16 sps:$4 sm:$0xff]   ;;  %v1810_v16 = vld [vmem:[#allocation2] ss:$16 sps:$4 sm:$0xff]   ;;  %v1812_v17 = vld [vmem:[#allocation2 + $0x8] ss:$16 sps:$4 sm:$0xff]  }
  0x41   :  { %1052 = vmatprep.subr.bf16.mxu1 %v1473_v19  ;;  %1297 = vmatmul.mubr.msk.f32.gmra.mrb[12].mxu0 %vm170_vm0, %v165_v34  ;;  %v1552_v18 = vld [vmem:[#allocation5 + $0x200] ss:$16 sps:$4 sm:$0xff]   ;;  %v1555_v19 = vld [vmem:[#allocation5 + $0x208] ss:$16 sps:$4 sm:$0xff]   ;;  %v1575_v29 = vld [vmem:[#allocation5 + $0x244] ss:$16 sps:$4 sm:$0xff]  }
  0x42   :  { %301 = vmatprep.mubr.f32.mxu0 %v1694_v0  ;;  %v1522_v0 = vld [vmem:[#allocation5 + $0x180] ss:$16 sps:$4 sm:$0xff]   ;;  %v1824_v25 = vld [vmem:[#allocation2 + $0x28] ss:$16 sps:$4 sm:$0xff]   ;;  %v1578_v30 = vld [vmem:[#allocation5 + $0x24c] ss:$16 sps:$4 sm:$0xff]  }
  0x43   :  { %v1834_v32 = vld [vmem:[#allocation2 + $0x40] ss:$16 sps:$4 sm:$0xff]   ;;  %s1278_s8 = sshll.u32 %s1695_s2, 4  ;;  %s1279_s8 = int_to_ptr.vmem [resolvable:$true] %s1278_s8 }
  0x44   :  { %v1573_v34 = vld [vmem:[#allocation5 + $0x240] ss:$16 sps:$4 sm:$0xff]   ;;  %s1662_s9 = scalar_lea.vmem %s1279_s8, 3072  ;;  %p1667_p3 = scmp.lt.s32.totalorder %s1279_s8, %s1279_s8 }
  0x45   :  { %1298 = vmatmul.mubr.msk.f32.gmra.mrb[14].mxu0 %vm170_vm0, %v166_v37  ;;  %v1587_v37 = vld [vmem:[#allocation5 + $0x264] ss:$16 sps:$4 sm:$0xff]   ;;  %p1663_p2 = scmp.ne.s32.totalorder %s1279_s8, %s1662_s9  ;;  %p1668_p4 = scmp.lt.s32.totalorder %s1662_s9, %s1662_s9 }
  0x46   :  { %1005 = vmatprep.mubr.bf16.mxu0 %v1806_v43 }
  0x47   :  { %980 = vmatpush1.bf16.xpose.msra.mxu0 %v1468_v20  ;;  %v1814_v20 = vld [vmem:[#allocation2 + $0x24] ss:$16 sps:$4 sm:$0xff]   ;;  %p1669_p5 = por %p1668_p4, %p1667_p3 }
  0x48   :  { %1053 = vmatpush1.bf16.xpose.msra.mxu1 %v1471_v21  ;;  %981 = vmatprep.subr.bf16.mxu0 %v1476_v22  ;;  %v1563_v21 = vld [vmem:[#allocation5 + $0x224] ss:$16 sps:$4 sm:$0xff]   ;;  %v1566_v22 = vld [vmem:[#allocation5 + $0x22c] ss:$16 sps:$4 sm:$0xff]  }
  0x49   :  { %1054 = vmatprep.subr.bf16.mxu1 %v1479_v23  ;;  %v1816_v23 = vld [vmem:[#allocation2 + $0x2c] ss:$16 sps:$4 sm:$0xff]   ;;  %p1670_p6 = pnand %p1669_p5, %p1663_p2 }
  0x4f   :  { %982 = vmatpush1.bf16.xpose.msra.mxu0 %v1474_v24  ;;  %v1822_v24 = vld [vmem:[#allocation2 + $0x20] ss:$16 sps:$4 sm:$0xff]  }
  0x50   :  { %1055 = vmatpush1.bf16.xpose.msra.mxu1 %v1477_v26  ;;  %983 = vmatprep.subr.bf16.mxu0 %v1482_v27  ;;  %v1561_v26 = vld [vmem:[#allocation5 + $0x220] ss:$16 sps:$4 sm:$0xff]   ;;  %v1564_v27 = vld [vmem:[#allocation5 + $0x228] ss:$16 sps:$4 sm:$0xff]  }
  0x51   :  { %1056 = vmatprep.subr.bf16.mxu1 %v1485_v28  ;;  %v1826_v28 = vld [vmem:[#allocation2 + $0x44] ss:$16 sps:$4 sm:$0xff]  }
  0x57   :  { %984 = vmatpush1.bf16.xpose.msra.mxu0 %v1480_v31  ;;  %v1828_v31 = vld [vmem:[#allocation2 + $0x4c] ss:$16 sps:$4 sm:$0xff]  }
  0x58   :  { %1057 = vmatpush1.bf16.xpose.msra.mxu1 %v1483_v33  ;;  %985 = vmatprep.subr.bf16.mxu0 %v1488_v35  ;;  %v1836_v33 = vld [vmem:[#allocation2 + $0x48] ss:$16 sps:$4 sm:$0xff]  }
  0x59   :  { %1058 = vmatprep.subr.bf16.mxu1 %v1491_v36  ;;  %v1576_v35 = vld [vmem:[#allocation5 + $0x248] ss:$16 sps:$4 sm:$0xff]   ;;  %v1838_v36 = vld [vmem:[#allocation2 + $0x64] ss:$16 sps:$4 sm:$0xff]  }
  0x5f   :  { %986 = vmatpush1.bf16.xpose.msra.mxu0 %v1486_v39  ;;  %v1590_v39 = vld [vmem:[#allocation5 + $0x26c] ss:$16 sps:$4 sm:$0xff]  }
  0x60   :  { %1059 = vmatpush1.bf16.xpose.msra.mxu1 %v1489_v40  ;;  %987 = vmatprep.subr.bf16.mxu0 %v1494_v41  ;;  %v1840_v40 = vld [vmem:[#allocation2 + $0x6c] ss:$16 sps:$4 sm:$0xff]   ;;  %v1584_v41 = vld [vmem:[#allocation2 + $0x60] ss:$16 sps:$4 sm:$0xff]  }
  0x61   :  { %1060 = vmatprep.subr.bf16.mxu1 %v1497_v42  ;;  %v1593_v42 = vld [vmem:[#allocation2 + $0x68] ss:$16 sps:$4 sm:$0xff]  }
  0x67   :  { %988 = vmatpush1.bf16.xpose.msra.mxu0 %v1492_v44  ;;  %v1585_v44 = vld [vmem:[#allocation5 + $0x260] ss:$16 sps:$4 sm:$0xff]  }
  0x68   :  { %1061 = vmatpush1.bf16.xpose.msra.mxu1 %v1495_v45  ;;  %989 = vmatprep.subr.bf16.mxu0 %v1500_v46  ;;  %v1588_v45 = vld [vmem:[#allocation5 + $0x268] ss:$16 sps:$4 sm:$0xff]   ;;  %v1596_v46 = vld [vmem:[#allocation5 + $0x284] ss:$16 sps:$4 sm:$0xff]  }
  0x69   :  { %1062 = vmatprep.subr.bf16.mxu1 %v1503_v47  ;;  %v1599_v47 = vld [vmem:[#allocation5 + $0x28c] ss:$16 sps:$4 sm:$0xff]  }
  0x6f   :  { %990 = vmatpush1.bf16.xpose.msra.mxu0 %v1498_v48  ;;  %v1594_v48 = vld [vmem:[#allocation5 + $0x280] ss:$16 sps:$4 sm:$0xff]  }
  0x70   :  { %1063 = vmatpush1.bf16.xpose.msra.mxu1 %v1501_v49  ;;  %991 = vmatprep.subr.bf16.mxu0 %v1506_v50  ;;  %v1597_v49 = vld [vmem:[#allocation5 + $0x288] ss:$16 sps:$4 sm:$0xff]   ;;  %v1602_v50 = vld [vmem:[#allocation5 + $0x2a4] ss:$16 sps:$4 sm:$0xff]  }
  0x71   :  { %1064 = vmatprep.subr.bf16.mxu1 %v1509_v51  ;;  %v1605_v51 = vld [vmem:[#allocation5 + $0x2ac] ss:$16 sps:$4 sm:$0xff]  }
  0x77   :  { %992 = vmatpush1.bf16.xpose.msra.mxu0 %v1504_v52  ;;  %v1600_v52 = vld [vmem:[#allocation5 + $0x2a0] ss:$16 sps:$4 sm:$0xff]  }
  0x78   :  { %1065 = vmatpush1.bf16.xpose.msra.mxu1 %v1507_v53  ;;  %993 = vmatprep.subr.bf16.mxu0 %v1512_v54  ;;  %v1603_v53 = vld [vmem:[#allocation5 + $0x2a8] ss:$16 sps:$4 sm:$0xff]   ;;  %v1608_v54 = vld [vmem:[#allocation5 + $0x2c4] ss:$16 sps:$4 sm:$0xff]  }
  0x79   :  { %1066 = vmatprep.subr.bf16.mxu1 %v1515_v55  ;;  %v1611_v55 = vld [vmem:[#allocation5 + $0x2cc] ss:$16 sps:$4 sm:$0xff]  }
  0x7f   :  { %994 = vmatpush1.bf16.xpose.msra.mxu0 %v1510_v56  ;;  %v1606_v56 = vld [vmem:[#allocation5 + $0x2c0] ss:$16 sps:$4 sm:$0xff]  }
  0x80   :  { %1067 = vmatpush1.bf16.xpose.msra.mxu1 %v1513_v57  ;;  %995 = vmatprep.subr.bf16.mxu0 %v1518_v58  ;;  %v1614_v57 = vld [vmem:[#allocation5 + $0x2e4] ss:$16 sps:$4 sm:$0xff]   ;;  %v1612_v58 = vld [vmem:[#allocation5 + $0x2e0] ss:$16 sps:$4 sm:$0xff]  }
  0x81   :  { %1068 = vmatprep.subr.bf16.mxu1 %v1521_v59  ;;  %v1615_v59 = vld [vmem:[#allocation5 + $0x2e8] ss:$16 sps:$4 sm:$0xff]  }
  0x87   :  { %996 = vmatpush1.bf16.xpose.msra.mxu0 %v1516_v60 }
  0x88   :  { %1069 = vmatpush1.bf16.xpose.msra.mxu1 %v1519_v61  ;;  %997 = vmatprep.subr.bf16.mxu0 %v1524_v62 }
  0x89   :  { %1070 = vmatprep.subr.bf16.mxu1 %v1527_v63 }
  0x8f   :  { %998 = vmatpush1.bf16.xpose.msra.mxu0 %v1522_v0 }
  0x90   :  { %1071 = vmatpush1.bf16.xpose.msra.mxu1 %v1525_v1  ;;  %999 = vmatprep.subr.bf16.mxu0 %v1530_v2 }
  0x91   :  { %1072 = vmatprep.subr.bf16.mxu1 %v1533_v3 }
  0x97   :  { %1000 = vmatpush1.bf16.xpose.msra.mxu0 %v1528_v4 }
  0x98   :  { %1073 = vmatpush1.bf16.xpose.msra.mxu1 %v1531_v5  ;;  %1001 = vmatprep.subr.bf16.mxu0 %v1536_v6 }
  0x99   :  { %1074 = vmatprep.subr.bf16.mxu1 %v1539_v7 }
  0x9f   :  { %1002 = vmatpush1.bf16.xpose.msra.mxu0 %v1534_v8 }
  0xa0   :  { %1075 = vmatpush1.bf16.xpose.msra.mxu1 %v1537_v9  ;;  %1003 = vmatprep.subr.bf16.mxu0 %v1542_v10 }
  0xa1   :  { %1076 = vmatprep.subr.bf16.mxu1 %v1545_v11 }
  0xa7   :  { %1004 = vmatpush1.bf16.xpose.msra.mxu0 %v1540_v12 }
  0xa8   :  { %1077 = vmatpush1.bf16.xpose.msra.mxu1 %v1543_v13  ;;  %1119 = vmatprep.subr.bf16.mxu0 %v1554_v14 }
  0xa9   :  { %1184 = vmatprep.subr.bf16.mxu1 %v1557_v15 }
  0xae   :  { %1006 = vmatmul.mubr.bf16.vlgmr.msra.gmra.mrb[16].mxu0 %v1810_v16 }
  0xaf   :  { %1079 = vmatmul.mubr.bf16.vlgmr.msra.gmra.mrb[8].mxu1 %v1812_v17  ;;  %1120 = vmatpush1.bf16.xpose.msra.mxu0 %v1552_v18 }
  0xb0   :  { %1185 = vmatpush1.bf16.xpose.msra.mxu1 %v1555_v19  ;;  %1015 = vmatprep.mubr.bf16.mxu0 %v1814_v20 }
  0xb1   :  { %1121 = vmatprep.subr.bf16.mxu0 %v1563_v21  ;;  %1186 = vmatprep.subr.bf16.mxu1 %v1566_v22 }
  0xb2   :  { %1088 = vmatprep.mubr.bf16.mxu1 %v1816_v23 }
  0xb6   :  { %1016 = vmatmul.mubr.bf16.gmra.mrb[20].mxu0 %v1822_v24 }
  0xb7   :  { %1089 = vmatmul.mubr.bf16.gmra.mrb[12].mxu1 %v1824_v25  ;;  %1122 = vmatpush1.bf16.xpose.msra.mxu0 %v1561_v26 }
  0xb8   :  { %1187 = vmatpush1.bf16.xpose.msra.mxu1 %v1564_v27  ;;  %1025 = vmatprep.mubr.bf16.mxu0 %v1826_v28 }
  0xb9   :  { %1123 = vmatprep.subr.bf16.mxu0 %v1575_v29  ;;  %1188 = vmatprep.subr.bf16.mxu1 %v1578_v30 }
  0xba   :  { %1098 = vmatprep.mubr.bf16.mxu1 %v1828_v31 }
  0xbe   :  { %1026 = vmatmul.mubr.bf16.gmra.mrb[24].mxu0 %v1834_v32 }
  0xbf   :  { %1099 = vmatmul.mubr.bf16.gmra.mrb[16].mxu1 %v1836_v33  ;;  %1124 = vmatpush1.bf16.xpose.msra.mxu0 %v1573_v34 }
  0xc0   :  { %1189 = vmatpush1.bf16.xpose.msra.mxu1 %v1576_v35  ;;  %1035 = vmatprep.mubr.bf16.mxu0 %v1838_v36 }
  0xc1   :  { %1125 = vmatprep.subr.bf16.mxu0 %v1587_v37  ;;  %1190 = vmatprep.subr.bf16.mxu1 %v1590_v39 }
  0xc2   :  { %1108 = vmatprep.mubr.bf16.mxu1 %v1840_v40 }
  0xc6   :  { %1036 = vmatmul.mubr.bf16.gmra.mrb[28].mxu0 %v1584_v41 }
  0xc7   :  { %1109 = vmatmul.mubr.bf16.gmra.mrb[20].mxu1 %v1593_v42  ;;  %1126 = vmatpush1.bf16.xpose.msra.mxu0 %v1585_v44 }
  0xc8   :  { %1191 = vmatpush1.bf16.xpose.msra.mxu1 %v1588_v45  ;;  %1127 = vmatprep.subr.bf16.mxu0 %v1596_v46 }
  0xc9   :  { %1192 = vmatprep.subr.bf16.mxu1 %v1599_v47  ;;  %1151 = vmatprep.mubr.bf16.mxu0 %v1806_v43  ;;  %v1609_v43 = vld [vmem:[#allocation5 + $0x2c8] ss:$16 sps:$4 sm:$0xff]  }
  0xca   :  { %1216 = vmatprep.mubr.bf16.mxu1 %v1799_v38  ;;  %v1617_v38 = vld [vmem:[#allocation5 + $0x2ec] ss:$16 sps:$4 sm:$0xff]  }
  0xcf   :  { %1128 = vmatpush1.bf16.xpose.msra.mxu0 %v1594_v48 }
  0xd0   :  { %1193 = vmatpush1.bf16.xpose.msra.mxu1 %v1597_v49  ;;  %1129 = vmatprep.subr.bf16.mxu0 %v1602_v50 }
  0xd1   :  { %1194 = vmatprep.subr.bf16.mxu1 %v1605_v51 }
  0xd7   :  { %1130 = vmatpush1.bf16.xpose.msra.mxu0 %v1600_v52 }
  0xd8   :  { %1195 = vmatpush1.bf16.xpose.msra.mxu1 %v1603_v53  ;;  %1131 = vmatprep.subr.bf16.mxu0 %v1608_v54 }
  0xd9   :  { %1196 = vmatprep.subr.bf16.mxu1 %v1611_v55 }
  0xdf   :  { %1132 = vmatpush1.bf16.xpose.msra.mxu0 %v1606_v56 }
  0xe0   :  { %1197 = vmatpush1.bf16.xpose.msra.mxu1 %v1609_v43  ;;  %1133 = vmatprep.subr.bf16.mxu0 %v1614_v57 }
  0xe1   :  { %1198 = vmatprep.subr.bf16.mxu1 %v1617_v38 }
  0xe7   :  { %1134 = vmatpush1.bf16.xpose.msra.mxu0 %v1612_v58 }
  0xe8   :  { %1199 = vmatpush1.bf16.xpose.msra.mxu1 %v1615_v59 }
  0xee   :  { %1152 = vmatmul.mubr.bf16.vlgmr.msra.gmra.mrb[32].mxu0 %v1810_v16 }
  0xef   :  { %1217 = vmatmul.mubr.bf16.vlgmr.msra.gmra.mrb[24].mxu1 %v1812_v17  ;;  %1159 = vmatprep.mubr.bf16.mxu0 %v1814_v20 }
  0xf0   :  { %1224 = vmatprep.mubr.bf16.mxu1 %v1816_v23 }
  0xf6   :  { %1160 = vmatmul.mubr.bf16.gmra.mrb[36].mxu0 %v1822_v24 }
  0xf7   :  { %1225 = vmatmul.mubr.bf16.gmra.mrb[28].mxu1 %v1824_v25  ;;  %1167 = vmatprep.mubr.bf16.mxu0 %v1826_v28 }
  0xf8   :  { %1232 = vmatprep.mubr.bf16.mxu1 %v1828_v31 }
  0xfc   :  { %v261_v60 = vpop.f32.mrb[0].mxu0 }
  0xfd   :  { %v263_v61 = vpop.f32.mrb[1].mxu0 }
  0xfe   :  { %1168 = vmatmul.mubr.bf16.gmra.mrb[40].mxu0 %v1834_v32 }
  0xff   :  { %1233 = vmatmul.mubr.bf16.gmra.mrb[32].mxu1 %v1836_v33  ;;  %v1858_v62 = vpop.f32.mrb[0].mxu1  ;;  %1175 = vmatprep.mubr.bf16.mxu0 %v1838_v36 }
 0x100   :  { %v1860_v63 = vpop.f32.mrb[1].mxu1  ;;  %1240 = vmatprep.mubr.bf16.mxu1 %v1840_v40  ;;  %v267_v0 = vpop.f32.mrb[2].mxu0 }
 0x101   :  { %v269_v1 = vpop.f32.mrb[3].mxu0 }
 0x104   :  { %v273_v2 = vpop.f32.mrb[4].mxu0 }
 0x105   :  { %v275_v3 = vpop.f32.mrb[5].mxu0  ;;  %v1864_v4 = vpop.f32.mrb[2].mxu1 }
 0x106   :  { %1176 = vmatmul.mubr.bf16.gmra.mrb[44].mxu0 %v1584_v41  ;;  %v1866_v5 = vpop.f32.mrb[3].mxu1 }
 0x107   :  { %1241 = vmatmul.mubr.bf16.gmra.mrb[36].mxu1 %v1593_v42 }
 0x108   :  { %v279_v6 = vpop.f32.mrb[6].mxu0 }
 0x109   :  { %v281_v7 = vpop.f32.mrb[7].mxu0  ;;  %v1868_v8 = vpop.f32.mrb[4].mxu1 }
 0x10a   :  { %v1870_v9 = vpop.f32.mrb[5].mxu1 }
 0x10c   :  { %v285_v10 = vpop.f32.mrb[8].mxu0 }
 0x10d   :  { %v287_v11 = vpop.f32.mrb[9].mxu0  ;;  %v1872_v12 = vpop.f32.mrb[6].mxu1 }
 0x10e   :  { %v1874_v13 = vpop.f32.mrb[7].mxu1 }
 0x110   :  { %v291_v14 = vpop.f32.mrb[10].mxu0 }
 0x111   :  { %v293_v15 = vpop.f32.mrb[11].mxu0 }
 0x114   :  { %v1876_v16 = vpop.f32.mrb[12].mxu0 }
 0x115   :  { %v1878_v17 = vpop.f32.mrb[13].mxu0 }
 0x118   :  { %v1880_v18 = vpop.f32.mrb[14].mxu0 }
 0x119   :  { %v1882_v19 = vpop.f32.mrb[15].mxu0 }
 0x181   :  { %v1007_v20 = vpop.f32.mrb[16].mxu0 }
 0x182   :  { %v1080_v21 = vpop.f32.mrb[8].mxu1  ;;  %v1008_v22 = vadd.f32 %v1007_v20, %v261_v60  ;;  %v1009_v23 = vpop.f32.mrb[17].mxu0 }
 0x183   :  { %v1082_v24 = vpop.f32.mrb[9].mxu1  ;;  %v1010_v25 = vadd.f32 %v1009_v23, %v263_v61  ;;  %v1011_v26 = vpop.f32.mrb[18].mxu0 }
 0x184   :  { %v1084_v27 = vpop.f32.mrb[10].mxu1  ;;  %v1081_v28 = vadd.f32 %v1080_v21, %v1008_v22  ;;  %v1012_v29 = vadd.f32 %v1011_v26, %v267_v0  ;;  %v1013_v30 = vpop.f32.mrb[19].mxu0 }
 0x185   :  { %v1086_v31 = vpop.f32.mrb[11].mxu1  ;;  %v1083_v32 = vadd.f32 %v1082_v24, %v1010_v25  ;;  %v1014_v33 = vadd.f32 %v1013_v30, %v269_v1 }
 0x186   :  { %1249 = vst [vmem:[#allocation7] sm:$0xff] %v1081_v28  ;;  %v1085_v34 = vadd.f32 %v1084_v27, %v1012_v29 }
 0x187   :  { %1250 = vst [vmem:[#allocation7 + $0x8] sm:$0xff] %v1083_v32  ;;  %v1087_v35 = vadd.f32 %v1086_v31, %v1014_v33 }
 0x188   :  { %1252 = vst [vmem:[#allocation7 + $0x18] sm:$0xff] %v1085_v34 }
 0x189   :  { %1253 = vst [vmem:[#allocation7 + $0x20] sm:$0xff] %v1087_v35  ;;  %v1017_v36 = vpop.f32.mrb[20].mxu0 }
 0x18a   :  { %v1090_v37 = vpop.f32.mrb[12].mxu1  ;;  %v1018_v39 = vadd.f32 %v1017_v36, %v273_v2  ;;  %v1019_v40 = vpop.f32.mrb[21].mxu0 }
 0x18b   :  { %v1092_v41 = vpop.f32.mrb[13].mxu1  ;;  %v1020_v42 = vadd.f32 %v1019_v40, %v275_v3  ;;  %v1021_v44 = vpop.f32.mrb[22].mxu0 }
 0x18c   :  { %v1094_v45 = vpop.f32.mrb[14].mxu1  ;;  %v1022_v46 = vadd.f32 %v1021_v44, %v279_v6  ;;  %v1091_v47 = vadd.f32 %v1090_v37, %v1018_v39  ;;  %v1023_v48 = vpop.f32.mrb[23].mxu0 }
 0x18d   :  { %v1096_v49 = vpop.f32.mrb[15].mxu1  ;;  %v1024_v50 = vadd.f32 %v1023_v48, %v281_v7  ;;  %v1093_v51 = vadd.f32 %v1092_v41, %v1020_v42 }
 0x18e   :  { %1255 = vst [vmem:[#allocation7 + $0x30] sm:$0xff] %v1091_v47  ;;  %v1095_v52 = vadd.f32 %v1094_v45, %v1022_v46 }
 0x18f   :  { %1256 = vst [vmem:[#allocation7 + $0x38] sm:$0xff] %v1093_v51  ;;  %v1097_v53 = vadd.f32 %v1096_v49, %v1024_v50 }
 0x190   :  { %1258 = vst [vmem:[#allocation7 + $0x48] sm:$0xff] %v1095_v52 }
 0x191   :  { %1259 = vst [vmem:[#allocation7 + $0x50] sm:$0xff] %v1097_v53  ;;  %v1027_v54 = vpop.f32.mrb[24].mxu0 }
 0x192   :  { %v1100_v55 = vpop.f32.mrb[16].mxu1  ;;  %v1028_v56 = vadd.f32 %v1027_v54, %v285_v10  ;;  %v1029_v43 = vpop.f32.mrb[25].mxu0 }
 0x193   :  { %v1102_v57 = vpop.f32.mrb[17].mxu1  ;;  %v1030_v38 = vadd.f32 %v1029_v43, %v287_v11  ;;  %v1031_v58 = vpop.f32.mrb[26].mxu0 }
 0x194   :  { %v1104_v59 = vpop.f32.mrb[18].mxu1  ;;  %v1032_v60 = vadd.f32 %v1031_v58, %v291_v14  ;;  %v1101_v61 = vadd.f32 %v1100_v55, %v1028_v56  ;;  %v1033_v0 = vpop.f32.mrb[27].mxu0 }
 0x195   :  { %v1106_v1 = vpop.f32.mrb[19].mxu1  ;;  %v1034_v2 = vadd.f32 %v1033_v0, %v293_v15  ;;  %v1103_v3 = vadd.f32 %v1102_v57, %v1030_v38 }
 0x196   :  { %1261 = vst [vmem:[#allocation7 + $0x60] sm:$0xff] %v1101_v61  ;;  %v1105_v6 = vadd.f32 %v1104_v59, %v1032_v60 }
 0x197   :  { %1262 = vst [vmem:[#allocation7 + $0x68] sm:$0xff] %v1103_v3  ;;  %v1107_v7 = vadd.f32 %v1106_v1, %v1034_v2 }
 0x198   :  { %1264 = vst [vmem:[#allocation7 + $0x78] sm:$0xff] %v1105_v6 }
 0x199   :  { %1265 = vst [vmem:[#allocation7 + $0x80] sm:$0xff] %v1107_v7  ;;  %v1037_v20 = vpop.f32.mrb[28].mxu0 }
 0x19a   :  { %v1110_v21 = vpop.f32.mrb[20].mxu1  ;;  %v1038_v10 = vadd.f32 %v1037_v20, %v1876_v16  ;;  %v1039_v22 = vpop.f32.mrb[29].mxu0 }
 0x19b   :  { %v1112_v11 = vpop.f32.mrb[21].mxu1  ;;  %v1040_v23 = vadd.f32 %v1039_v22, %v1878_v17  ;;  %v1041_v14 = vpop.f32.mrb[30].mxu0 }
 0x19c   :  { %v1114_v24 = vpop.f32.mrb[22].mxu1  ;;  %v1042_v25 = vadd.f32 %v1041_v14, %v1880_v18  ;;  %v1111_v15 = vadd.f32 %v1110_v21, %v1038_v10  ;;  %v1043_v26 = vpop.f32.mrb[31].mxu0 }
 0x19d   :  { %v1116_v27 = vpop.f32.mrb[23].mxu1  ;;  %v1044_v28 = vadd.f32 %v1043_v26, %v1882_v19  ;;  %v1113_v29 = vadd.f32 %v1112_v11, %v1040_v23 }
 0x19e   :  { %1267 = vst [vmem:[#allocation7 + $0x90] sm:$0xff] %v1111_v15  ;;  %v1115_v30 = vadd.f32 %v1114_v24, %v1042_v25 }
 0x19f   :  { %1268 = vst [vmem:[#allocation7 + $0x98] sm:$0xff] %v1113_v29  ;;  %v1117_v31 = vadd.f32 %v1116_v27, %v1044_v28 }
 0x1a0   :  { %1270 = vst [vmem:[#allocation7 + $0xa8] sm:$0xff] %v1115_v30 }
 0x1a1   :  { %1271 = vst [vmem:[#allocation7 + $0xb0] sm:$0xff] %v1117_v31 }
 0x1c1   :  { %v1153_v16 = vpop.f32.mrb[32].mxu0 }
 0x1c2   :  { %v1218_v32 = vpop.f32.mrb[24].mxu1  ;;  %v1154_v17 = vadd.f32 %v1153_v16, %v1860_v63  ;;  %v1155_v33 = vpop.f32.mrb[33].mxu0 }
 0x1c3   :  { %v1220_v34 = vpop.f32.mrb[25].mxu1  ;;  %v1156_v35 = vpop.f32.mrb[34].mxu0 }
 0x1c4   :  { %v1221_v18 = vpop.f32.mrb[26].mxu1  ;;  %v1219_v36 = vadd.f32 %v1218_v32, %v1154_v17  ;;  %v1157_v37 = vadd.f32 %v1858_v62, %v1156_v35  ;;  %v1158_v39 = vpop.f32.mrb[35].mxu0 }
 0x1c5   :  { %v1223_v19 = vpop.f32.mrb[27].mxu1 }
 0x1c6   :  { %1251 = vst [vmem:[#allocation7 + $0x10] sm:$0xff] %v1219_v36  ;;  %v1222_v40 = vadd.f32 %v1221_v18, %v1157_v37 }
 0x1c8   :  { %1254 = vst [vmem:[#allocation7 + $0x28] sm:$0xff] %v1222_v40 }
 0x1c9   :  { %v1161_v41 = vpop.f32.mrb[36].mxu0 }
 0x1ca   :  { %v1226_v42 = vpop.f32.mrb[28].mxu1  ;;  %v1162_v44 = vadd.f32 %v1161_v41, %v1866_v5  ;;  %v1163_v45 = vpop.f32.mrb[37].mxu0 }
 0x1cb   :  { %v1228_v46 = vpop.f32.mrb[29].mxu1  ;;  %v1164_v47 = vpop.f32.mrb[38].mxu0 }
 0x1cc   :  { %v1229_v63 = vpop.f32.mrb[30].mxu1  ;;  %v1227_v48 = vadd.f32 %v1226_v42, %v1162_v44  ;;  %v1165_v49 = vadd.f32 %v1864_v4, %v1164_v47  ;;  %v1166_v50 = vpop.f32.mrb[39].mxu0 }
 0x1cd   :  { %v1231_v51 = vpop.f32.mrb[31].mxu1 }
 0x1ce   :  { %1257 = vst [vmem:[#allocation7 + $0x40] sm:$0xff] %v1227_v48  ;;  %v1230_v62 = vadd.f32 %v1229_v63, %v1165_v49 }
 0x1d0   :  { %1260 = vst [vmem:[#allocation7 + $0x58] sm:$0xff] %v1230_v62 }
 0x1d1   :  { %v1169_v52 = vpop.f32.mrb[40].mxu0 }
 0x1d2   :  { %v1234_v53 = vpop.f32.mrb[32].mxu1  ;;  %v1170_v54 = vadd.f32 %v1169_v52, %v1870_v9  ;;  %v1171_v55 = vpop.f32.mrb[41].mxu0 }
 0x1d3   :  { %v1236_v56 = vpop.f32.mrb[33].mxu1  ;;  %v1172_v43 = vpop.f32.mrb[42].mxu0 }
 0x1d4   :  { %v1237_v5 = vpop.f32.mrb[34].mxu1  ;;  %v1235_v57 = vadd.f32 %v1234_v53, %v1170_v54  ;;  %v1173_v38 = vadd.f32 %v1868_v8, %v1172_v43  ;;  %v1174_v58 = vpop.f32.mrb[43].mxu0 }
 0x1d5   :  { %v1239_v59 = vpop.f32.mrb[35].mxu1 }
 0x1d6   :  { %1263 = vst [vmem:[#allocation7 + $0x70] sm:$0xff] %v1235_v57  ;;  %v1238_v4 = vadd.f32 %v1237_v5, %v1173_v38 }
 0x1d8   :  { %1266 = vst [vmem:[#allocation7 + $0x88] sm:$0xff] %v1238_v4 }
 0x1d9   :  { %v1177_v60 = vpop.f32.mrb[44].mxu0 }
 0x1da   :  { %v1242_v61 = vpop.f32.mrb[36].mxu1  ;;  %v1178_v0 = vadd.f32 %v1177_v60, %v1874_v13  ;;  %v1179_v1 = vpop.f32.mrb[45].mxu0 }
 0x1db   :  { %v1244_v2 = vpop.f32.mrb[37].mxu1  ;;  %v1180_v9 = vpop.f32.mrb[46].mxu0 }
 0x1dc   :  { %v1245_v3 = vpop.f32.mrb[38].mxu1  ;;  %v1243_v6 = vadd.f32 %v1242_v61, %v1178_v0  ;;  %v1181_v7 = vadd.f32 %v1872_v12, %v1180_v9  ;;  %v1182_v20 = vpop.f32.mrb[47].mxu0 }
 0x1dd   :  { %v1247_v8 = vpop.f32.mrb[39].mxu1 }
 0x1de   :  { %1269 = vst [vmem:[#allocation7 + $0xa0] sm:$0xff] %v1243_v6  ;;  %v1246_v21 = vadd.f32 %v1245_v3, %v1181_v7 }
 0x1e0   :  { %1272 = vst [vmem:[#allocation7 + $0xb8] sm:$0xff] %v1246_v21 }
 0x1e1   :  { %1673 = shalt.err (!%p1670_p6)
}
 0x1e2   :  { %s1674_s12 = scalar_lea.hbm %s1912_s4, 3072 }
 0x1e3   :  { %p1675_p7 = scmp.ne.s32.totalorder %s1912_s4, %s1674_s12  ;;  %p1678_p8 = scmp.lt.u32.totalorder %s1674_s12, %s1912_s4 }
 0x1e5   :  { %p1680_p9 = pnand %p1678_p8, %p1675_p7 }
 0x1e7   :  { %1683 = shalt.err (!%p1680_p9)
}
 0x1e8   :  { %s1696_s16 = smov 384   ;;  %s1697_s17 = smov 24  }
 0x1e9   :  { %1284 = dma.vmem_to_hbm [thread:$0]  %s1279_s8, 3072, %s1912_s4, [#allocation4], %s1696_s16, %s1696_s16, %s1697_s17  }
 0x1ea   :  { %1688 = dma.done.wait [#allocation4], 3072  }
 0x1eb   :  { %1689 = vsyncadd [#allocation4], 4294964224 }
 0x1ec   :  { %1288 = vsyncpa [#allocation3], 1 }
 0x1ed   :  { %1289 = vsyncpa [#allocation6], 1 }
 0x1ee   :  { %1290 = vsyncpa [#allocation4], 1 }

</bundles_post_ra>
